<compile_context>
chip_gen: v7x
topology: tpu7x:2x2x1
jax: 0.10.0
libtpu: 0.0.40
codegen_flags: <defaults>
</compile_context>

<pallas_src>
import jax
import jax.numpy as jnp
from jax import lax
from jax.experimental import pallas as pl
from jax.experimental.pallas import tpu as pltpu

# ---- synthetic model config (shapes implied by the module's original_model) ----
N, CIN, H, W = 2, 4, 16, 16
COUT, KH, KW = 8, 3, 3
PAD = (KH - 1) // 2          # 'same' padding
S = H * W                    # 256 spatial positions per image
STOT = N * S                 # 512 fused (batch x spatial) lanes
K = KH * KW * CIN            # 36 im2col rows
KB = K + 1                   # +1 row of ones -> conv bias rides the matmul


def bottom_kernel(w_ref, col_ref, o_ref):
    """Gridless, fully VMEM-resident.

    w_ref   : (COUT, KB)   conv weights with bias as the last column
    col_ref : (KB, STOT)   im2col patches with a trailing row of ones
    o_ref   : (N, COUT)    pooled features, written directly in (batch, channel) order
    """
    # conv + bias for every output pixel of every image: one lane-dense MXU matmul.
    y = jnp.dot(w_ref[...], col_ref[...],
                preferred_element_type=jnp.float32)            # (COUT, STOT) f32
    y = jnp.maximum(y, 0.0)                                    # ReLU (VPU)

    # Global average pool per image: build the (N, STOT) selector in-kernel (no DMA'd
    # pooling operand) and contract the lane axis of both operands so the output is
    # (N, COUT) with no transpose anywhere.
    img = lax.broadcasted_iota(jnp.int32, (N, STOT), 0)
    lane = lax.broadcasted_iota(jnp.int32, (N, STOT), 1)
    in_img = (lane >= img * S) & (lane < (img + 1) * S)
    pool = jnp.where(in_img, jnp.float32(1.0 / S), jnp.float32(0.0))   # (N, STOT)

    o_ref[...] = lax.dot_general(
        pool, y, (((1,), (1,)), ((), ())),
        preferred_element_type=jnp.float32).astype(o_ref.dtype)        # (N, COUT)


def prepare_params(w, b, compute_dtype=jnp.float32):
    """Per-checkpoint (NOT per-call) parameter prep.

    w: (KH, KW, CIN, COUT), b: (COUT,) -> (COUT, KB) with bias as the last column.
    Set compute_dtype=jnp.bfloat16 on v6e/v7x for the native MXU path (tolerance ~1e-2).
    """
    w_aug = jnp.concatenate([w.reshape(K, COUT), b.reshape(1, COUT)], axis=0).T
    return w_aug.astype(compute_dtype)


@jax.jit
def bottom_forward(x_nchw, w_aug):
    """x_nchw: (N, CIN, H, W) f32; w_aug: (COUT, KB) -> (N, COUT) f32."""
    # Layout plumbing (fused under jit): pad + im2col with (kh,kw,ci)-major rows and
    # (n,h,w)-major columns; the trailing row of ones folds the conv bias into the matmul.
    xpad = jnp.pad(x_nchw, ((0, 0), (0, 0), (PAD, PAD), (PAD, PAD)))     # (N,CIN,HP,WP)
    patches = jnp.stack(
        [xpad[:, :, kh:kh + H, kw:kw + W]
         for kh in range(KH) for kw in range(KW)], axis=0)               # (9,N,CIN,H,W)
    col = patches.transpose(0, 2, 1, 3, 4).reshape(K, STOT)              # (36, 512)
    col = jnp.pad(col, ((0, 1), (0, 0)), constant_values=1.0)            # (37, 512)
    col = col.astype(w_aug.dtype)

    return pl.pallas_call(
        bottom_kernel,
        out_shape=jax.ShapeDtypeStruct((N, COUT), jnp.float32),
        in_specs=[
            pl.BlockSpec(memory_space=pltpu.MemorySpace.VMEM),
            pl.BlockSpec(memory_space=pltpu.MemorySpace.VMEM),
        ],
        out_specs=pl.BlockSpec(memory_space=pltpu.MemorySpace.VMEM),
    )(w_aug, col)


def reference_forward(x_nchw, w, b):
    """Pure-JAX reference of the same forward pass (correctness check)."""
    x = jnp.transpose(x_nchw, (0, 2, 3, 1))            # NHWC
    y = lax.conv_general_dilated(
        x, w, window_strides=(1, 1), padding="SAME",
        dimension_numbers=("NHWC", "HWIO", "NHWC"))
    y = jnp.maximum(y + b[None, None, None, :], 0.0)
    return jnp.mean(y, axis=(1, 2))                    # (N, COUT)


if __name__ == "__main__":
    key = jax.random.PRNGKey(0)
    kx, kw_, kb_ = jax.random.split(key, 3)

    # deterministic synthetic parameters (shapes from the module's original_model)
    x = jax.random.normal(kx, (N, CIN, H, W), dtype=jnp.float32)
    w = jax.random.normal(kw_, (KH, KW, CIN, COUT), dtype=jnp.float32) * 0.1
    b = jax.random.normal(kb_, (COUT,), dtype=jnp.float32) * 0.1

    # hoisted per-checkpoint prep (zero per-call cost)
    w_aug = jax.block_until_ready(prepare_params(w, b))

    out = jax.block_until_ready(bottom_forward(x, w_aug))
    ref = reference_forward(x, w, b)

    assert out.shape == (N, COUT)
    assert jnp.allclose(out, ref, atol=1e-4, rtol=1e-4), (out, ref)

    print("KERNEL_OK")
</pallas_src>

<mosaic_0001>
module attributes {stable_mosaic.version = 11 : i64} {
  func.func @bottom_kernel(%arg0: memref<8x37xf32, #tpu.memory_space<vmem>>, %arg1: memref<37x512xf32, #tpu.memory_space<vmem>>, %arg2: memref<2x8xf32, #tpu.memory_space<vmem>>) attributes {dimension_semantics = [], scalar_prefetch = 0 : i64, scratch_operands = 0 : i64, tpu.core_type = #tpu.core_type<tc>} {
    %c0 = arith.constant 0 : index
    %c0_0 = arith.constant 0 : index
    %0 = vector.load %arg0[%c0, %c0_0] : memref<8x37xf32, #tpu.memory_space<vmem>>, vector<8x37xf32>
    %c0_1 = arith.constant 0 : index
    %c0_2 = arith.constant 0 : index
    %1 = vector.load %arg1[%c0_1, %c0_2] : memref<37x512xf32, #tpu.memory_space<vmem>>, vector<37x512xf32>
    %cst = arith.constant dense<0.000000e+00> : vector<8x512xf32>
    %2 = tpu.matmul %0, %1, %cst {dimension_numbers = #tpu.dot_dimension_numbers<[1], [0], [0], [1], [0, 0, 1, 1], [], []>} : vector<8x37xf32>, vector<37x512xf32>, vector<8x512xf32> -> vector<8x512xf32>
    %cst_3 = arith.constant 0.000000e+00 : f32
    %3 = vector.broadcast %cst_3 : f32 to vector<8x512xf32>
    %4 = arith.maximumf %2, %3 : vector<8x512xf32>
    %5 = tpu.iota {dimensions = array<i32: 0>} : vector<2x512xi32>
    %6 = tpu.iota {dimensions = array<i32: 1>} : vector<2x512xi32>
    %c256_i32 = arith.constant 256 : i32
    %7 = vector.broadcast %c256_i32 : i32 to vector<2x512xi32>
    %8 = arith.muli %5, %7 : vector<2x512xi32>
    %9 = arith.cmpi sge, %6, %8 : vector<2x512xi32>
    %c1_i32 = arith.constant 1 : i32
    %10 = vector.broadcast %c1_i32 : i32 to vector<2x512xi32>
    %11 = arith.addi %5, %10 : vector<2x512xi32>
    %c256_i32_4 = arith.constant 256 : i32
    %12 = vector.broadcast %c256_i32_4 : i32 to vector<2x512xi32>
    %13 = arith.muli %11, %12 : vector<2x512xi32>
    %14 = arith.cmpi slt, %6, %13 : vector<2x512xi32>
    %15 = arith.andi %9, %14 : vector<2x512xi1>
    %cst_5 = arith.constant 3.906250e-03 : f32
    %cst_6 = arith.constant 0.000000e+00 : f32
    %16 = vector.broadcast %cst_5 : f32 to vector<2x512xf32>
    %17 = vector.broadcast %cst_6 : f32 to vector<2x512xf32>
    %18 = arith.select %15, %16, %17 : vector<2x512xi1>, vector<2x512xf32>
    %cst_7 = arith.constant dense<0.000000e+00> : vector<2x8xf32>
    %19 = tpu.matmul %18, %4, %cst_7 {dimension_numbers = #tpu.dot_dimension_numbers<[1], [1], [0], [0], [0, 0, 1, 0], [], []>} : vector<2x512xf32>, vector<8x512xf32>, vector<2x8xf32> -> vector<2x8xf32>
    %c0_8 = arith.constant 0 : index
    %c0_9 = arith.constant 0 : index
    %20 = vector.load %arg2[%c0_8, %c0_9] : memref<2x8xf32, #tpu.memory_space<vmem>>, vector<2x8xf32>
    tpu.vector_store %arg2[%c0_8, %c0_9], %19 {strides = array<i32>} : memref<2x8xf32, #tpu.memory_space<vmem>>, vector<2x8xf32>,
    return
  }
}

</mosaic_0001>

<bundles_post_ra>
// kernel: bottom_forward.1
= control target key start
LH: loop header
LB: loop body
LE: loop exit
PB: predicated region body
PF: predicated region fallthrough
CT: control target
= control target key end

     0   :  { %v432_v7 = vmov 0.0   ;;  %vm37_vm0 = vcmask 1044480   ;;  %s525_s0 = inlined_call_operand.vmem [shape: f32[8,37], index: 0, kind: input, shape index: {}]   ;;  %s526_s1 = inlined_call_operand.vmem [shape: f32[37,512], index: 1, kind: input, shape index: {}]   ;;  %s527_s2 = inlined_call_operand.hbm [shape: f32[2,8], index: 2, kind: output, shape index: {}]  }
   0x1   :  { %v14_v0 = vld [vmem:[%s526_s1 + $0x8] sm:$0xff]  ;;  %v16_v2 = vld [vmem:[%s526_s1 + $0x18] sm:$0xff]  ;;  %v13_v5 = vld [vmem:[%s526_s1] sm:$0xff]  ;;  %114 = vmatprep.mubr.f32.mxu0 %v432_v7  ;;  %185 = vmatprep.mubr.f32.mxu1 %v432_v7 }
   0x2   :  { %v18_v1 = vld [vmem:[%s526_s1 + $0x28] sm:$0xff]  ;;  %v20_v4 = vld [vmem:[%s526_s1 + $0x38] sm:$0xff]  ;;  %v17_v6 = vld [vmem:[%s526_s1 + $0x20] sm:$0xff] }
   0x3   :  { %v388_v3 = vpack.c.bf16 %v18_v1, %v14_v0  ;;  %v396_v8 = vpack.c.bf16 %v20_v4, %v16_v2  ;;  %v390_v9 = vpack.c.bf16 %v17_v6, %v13_v5  ;;  %v15_v10 = vld [vmem:[%s526_s1 + $0x10] sm:$0xff]  ;;  %v22_v12 = vld [vmem:[%s526_s1 + $0x48] sm:$0xff]  ;;  %v24_v15 = vld [vmem:[%s526_s1 + $0x58] sm:$0xff] }
   0x4   :  { %v19_v11 = vld [vmem:[%s526_s1 + $0x30] sm:$0xff]  ;;  %v26_v14 = vld [vmem:[%s526_s1 + $0x68] sm:$0xff]  ;;  %v28_v16 = vld [vmem:[%s526_s1 + $0x78] sm:$0xff] }
   0x5   :  { %389 = vmatprep.subr.bf16.mxu0 %v388_v3  ;;  %v398_v13 = vpack.c.bf16 %v19_v11, %v15_v10  ;;  %397 = vmatprep.subr.bf16.mxu1 %v396_v8  ;;  %v392_v17 = vpack.c.bf16 %v26_v14, %v22_v12  ;;  %v400_v18 = vpack.c.bf16 %v28_v16, %v24_v15  ;;  %v21_v19 = vld [vmem:[%s526_s1 + $0x40] sm:$0xff]  ;;  %v23_v21 = vld [vmem:[%s526_s1 + $0x50] sm:$0xff]  ;;  %v30_v25 = vld [vmem:[%s526_s1 + $0x88] sm:$0x1f] }
   0x6   :  { %391 = vmatpush1.bf16.msra.mxu0 %v390_v9  ;;  %v25_v20 = vld [vmem:[%s526_s1 + $0x60] sm:$0xff]  ;;  %v27_v23 = vld [vmem:[%s526_s1 + $0x70] sm:$0xff]  ;;  %v32_v26 = vld [vmem:[%s526_s1 + $0x98] sm:$0x1f] }
   0x7   :  { %399 = vmatpush1.bf16.msra.mxu1 %v398_v13  ;;  %v394_v22 = vpack.c.bf16 %v25_v20, %v21_v19  ;;  %393 = vmatprep.subr.bf16.mxu0 %v392_v17  ;;  %v402_v24 = vpack.c.bf16 %v27_v23, %v23_v21 }
   0x8   :  { %401 = vmatprep.subr.bf16.mxu1 %v400_v18 }
   0x9   :  { %7 = vsyncpa [#allocation3], 0  ;;  %v29_v27 = vld [vmem:[%s526_s1 + $0x80] sm:$0x1f]  ;;  %v31_v28 = vld [vmem:[%s526_s1 + $0x90] sm:$0x1f]  ;;  %v196_v30 = vlaneseq }
   0xa   :  { %395 = vmatpush1.bf16.msra.mxu0 %v394_v22  ;;  %v12_v29 = vld [vmem:[%s525_s0] sm:$0xff]  ;;  %vm33_vm1 = vcmask 302080   ;;  %v433_v39 = vmov 0.00390625   ;;  %s434_s0 = smov [#allocation2]   ;;  %vm362_vm14 = vcmask 58368  }
   0xb   :  { %403 = vmatpush1.bf16.msra.mxu1 %v402_v24  ;;  %378 = vmatprep.subr.msk.mxu0 %vm37_vm0, %v30_v25  ;;  %v197_v31 = vshrl.u32 %v196_v30, 7  ;;  %v199_v32 = vand.u32 127, %v196_v30  ;;  %s370_s1 = sshll.u32 %s434_s0, 4  ;;  %s371_s1 = int_to_ptr.vmem [resolvable:$true] %s370_s1 }
   0xc   :  { %381 = vmatprep.subr.msk.mxu1 %vm37_vm0, %v32_v26  ;;  %s408_s23 = scalar_lea.vmem %s371_s1, 32  ;;  %p413_p1 = scmp.lt.s32.totalorder %s371_s1, %s371_s1 }
   0xd   :  { %v208_v33 = vadd.s32 1, %v197_v31  ;;  %v200_v34 = vadd.s32 128, %v199_v32  ;;  %v203_v35 = vmul.u32 256, %v197_v31  ;;  %v202_v37 = vadd.s32 384, %v199_v32  ;;  %p409_p0 = scmp.ne.s32.totalorder %s371_s1, %s408_s23  ;;  %p414_p2 = scmp.lt.s32.totalorder %s408_s23, %s408_s23 }
   0xe   :  { %379 = vmatpush1.msk.msra.mxu0 %vm37_vm0, %v29_v27  ;;  %v201_v38 = vadd.s32 256, %v199_v32 }
   0xf   :  { %382 = vmatpush1.msk.msra.mxu1 %vm37_vm0, %v31_v28  ;;  %380 = vmatmul.mubr.msk.f32.vlgmr.msra.gmra.mrb[0].mxu0 %vm33_vm1, %v12_v29  ;;  %v209_v36 = vmul.u32 256, %v208_v33  ;;  %vm205_vm2 = vcmp.ge.s32.totalorder %v200_v34, %v203_v35  ;;  %vm207_vm4 = vcmp.ge.s32.totalorder %v202_v37, %v203_v35  ;;  %vm204_vm7 = vcmp.ge.s32.totalorder %v199_v32, %v203_v35  ;;  %p415_p3 = por %p414_p2, %p413_p1 }
  0x10   :  { %383 = vmatmul.mubr.msk.f32.vlgmr.msra.gmra.mrb[0].mxu1 %vm33_vm1, %v12_v29  ;;  %vm206_vm9 = vcmp.ge.s32.totalorder %v201_v38, %v203_v35 }
  0x11   :  { %vm211_vm3 = vcmp.lt.s32.totalorder %v200_v34, %v209_v36  ;;  %vm213_vm6 = vcmp.lt.s32.totalorder %v202_v37, %v209_v36  ;;  %vm210_vm8 = vcmp.lt.s32.totalorder %v199_v32, %v209_v36  ;;  %vm212_vm11 = vcmp.lt.s32.totalorder %v201_v38, %v209_v36  ;;  %p416_p4 = pnand %p415_p3, %p409_p0 }
  0x12   :  { %vm215_vm5 = vmand %vm205_vm2, %vm211_vm3 }
  0x13   :  { %384 = vmatprep.mubr.msk.f32.mxu1 %vm215_vm5, %v433_v39  ;;  %vm217_vm10 = vmand %vm207_vm4, %vm213_vm6 }
  0x14   :  { %386 = vmatprep.mubr.msk.f32.mxu0 %vm217_vm10, %v433_v39  ;;  %vm214_vm12 = vmand %vm204_vm7, %vm210_vm8 }
  0x15   :  { %vm216_vm13 = vmand %vm206_vm9, %vm212_vm11 }
  0xe2   :  { %v116_v40 = vpop.f32.mrb[0].mxu0 }
  0xe3   :  { %v187_v41 = vpop.f32.mrb[0].mxu1  ;;  %v118_v42 = vpop.f32.mrb[1].mxu0  ;;  %v192_v45 = vmax.f32 %v116_v40, 0.0 }
  0xe4   :  { %v193_v43 = vmax.f32 %v118_v42, 0.0  ;;  %v189_v44 = vpop.f32.mrb[1].mxu1  ;;  %v194_v47 = vmax.f32 %v187_v41, 0.0 }
  0xe5   :  { %v195_v46 = vmax.f32 %v189_v44, 0.0 }
  0xe6   :  { %222 = vmatprep.subr.mxu1 %v193_v43 }
  0xe7   :  { %292 = vmatprep.subr.mxu0 %v195_v46  ;;  %223 = vmatpush1.xpose.msra.mxu1 %v192_v45 }
  0xe8   :  { %293 = vmatpush1.xpose.msra.mxu0 %v194_v47 }
  0xea   :  { %385 = vmatmul.mubr.msk.f32.vlgmr.msra.gmra.mrb[2].mxu1 %vm214_vm12, %v433_v39 }
  0xeb   :  { %387 = vmatmul.mubr.msk.f32.vlgmr.msra.gmra.mrb[2].mxu0 %vm216_vm13, %v433_v39 }
 0x1bd   :  { %v288_v48 = vpop.f32.mrb[2].mxu1 }
 0x1be   :  { %v358_v49 = vpop.f32.mrb[2].mxu0  ;;  %v290_v50 = vpop.f32.mrb[3].mxu1 }
 0x1bf   :  { %v359_v51 = vadd.f32 %v358_v49, %v288_v48  ;;  %v360_v52 = vpop.f32.mrb[3].mxu0 }
 0x1c1   :  { %363 = vst.msk [vmem:[#allocation2] sm:$0x3] %vm362_vm14, %v359_v51 }
 0x1c2   :  { %419 = shalt.err (!%p416_p4)
}
 0x1c3   :  { %s420_s26 = scalar_lea.hbm %s527_s2, 32 }
 0x1c4   :  { %p421_p5 = scmp.ne.s32.totalorder %s527_s2, %s420_s26  ;;  %p424_p6 = scmp.lt.u32.totalorder %s420_s26, %s527_s2 }
 0x1c6   :  { %p426_p7 = pnand %p424_p6, %p421_p5 }
 0x1c8   :  { %429 = shalt.err (!%p426_p7)
}
 0x1c9   :  { %373 = dma.vmem_to_hbm [thread:$0]  %s371_s1, 32, %s527_s2, [#allocation3]  }
 0x1ca   :  { %430 = dma.done.wait [#allocation3], 32  }
 0x1cb   :  { %431 = vsyncadd [#allocation3], 4294967264 }
 0x1cc   :  { %377 = vsyncpa [#allocation3], 1 }

</bundles_post_ra>
